<compile_context>
chip_gen: v5e
topology: v5e:2x2
jax: 0.10.0
libtpu: 0.0.40
codegen_flags: <defaults>
</compile_context>

<pallas_src>
import functools

import jax
import jax.numpy as jnp
from jax.experimental import pallas as pl
from jax.experimental.pallas import tpu as pltpu

_LANE = 128
_SUBLANES_F32 = 8
_MXU_CROSSOVER_CIN = 32  # VPU broadcast-MACs up to this many input channels.


def _fused_conv_bn_relu_kernel(x_ref, w_ref, shift_ref, o_ref, *,
                               b_blk, c_in, c_out):
    # x_ref:     (b_blk*c_in,  T)  -- T on the lane axis, multiple of 128
    # w_ref:     (c_out, c_in)     BN-scale-folded 1x1 conv weight (resident)
    # shift_ref: (c_out, 1)        folded BN shift (beta - mean * scale)
    # o_ref:     (b_blk*c_out, T)
    w = w_ref[...]                                  # f32
    shift = shift_ref[...]                          # f32, (c_out, 1)
    x = x_ref[...].astype(jnp.float32)              # upcast per-vreg (free vs HBM)

    outs = []
    for bi in range(b_blk):                         # static, small
        base = bi * c_in
        if c_in <= _MXU_CROSSOVER_CIN:
            # Tiny contraction: VPU broadcast multiply-adds, BN shift folded
            # into the accumulator init.
            acc = w[:, 0:1] * x[base:base + 1, :] + shift       # (c_out, T)
            for ci in range(1, c_in):
                acc = acc + w[:, ci:ci + 1] * x[base + ci:base + ci + 1, :]
        else:
            acc = jnp.dot(w, x[base:base + c_in, :],
                          preferred_element_type=jnp.float32) + shift
        outs.append(acc)

    y = outs[0] if b_blk == 1 else jnp.concatenate(outs, axis=0)
    o_ref[...] = jnp.maximum(y, 0.0).astype(o_ref.dtype)


def _pick_batch_block(n, c_in):
    """Largest divisor of n with b_blk * c_in <= 8 (fill f32 sublanes)."""
    if c_in >= _SUBLANES_F32:
        return 1
    cap = max(1, _SUBLANES_F32 // c_in)
    for cand in range(min(cap, n), 0, -1):
        if n % cand == 0:
            return cand
    return 1


def custom2d_layer_forward(x_nchw, weight, gamma, beta, running_mean,
                           running_var, eps=1e-5, hw_tile_max=32768,
                           vmem_budget_bytes=24 * 1024 * 1024):
    """x_nchw: (N, C_in, H, W). weight: (C_out, C_in) for a 1x1 conv (bias=False)."""
    n, c_in, h, w = x_nchw.shape
    c_out = weight.shape[0]
    hw = h * w
    x_bytes = jnp.dtype(x_nchw.dtype).itemsize
    out_dtype = x_nchw.dtype
    out_bytes = jnp.dtype(out_dtype).itemsize

    # Fold BN (eval mode): scale into the weight, shift folded into MAC init.
    scale = gamma.astype(jnp.float32) * jax.lax.rsqrt(
        running_var.astype(jnp.float32) + eps)                       # (C_out,)
    w_folded = (weight.astype(jnp.float32) * scale[:, None])         # (C_out, C_in)
    shift = (beta.astype(jnp.float32)
             - running_mean.astype(jnp.float32) * scale).reshape(c_out, 1)

    # Batch-block to fill sublanes; view input as (N/b_blk, b_blk*C_in, H*W).
    # Contiguous reshape on NCHW -> free, no transpose / extra HBM pass.
    b_blk = _pick_batch_block(n, c_in)
    rows_in = b_blk * c_in
    rows_out = b_blk * c_out
    x3 = x_nchw.reshape(n // b_blk, rows_in, hw)

    # Spatial tile on the lane axis: big (step-overhead amortized), multiple of
    # 128, capped by the double-buffered VMEM budget.
    hw_tile_max = max(_LANE, (hw_tile_max // _LANE) * _LANE)   # guard alignment
    tile = min(hw_tile_max, pl.cdiv(hw, _LANE) * _LANE)

    def _step_bytes(t):
        # double-buffered input + output blocks (weight/shift are negligible)
        return 2 * t * (rows_in * x_bytes + rows_out * out_bytes)

    while tile > _LANE and _step_bytes(tile) > vmem_budget_bytes:
        tile = max(_LANE, (tile // 2 // _LANE) * _LANE)

    # No pad / slice-back: ragged last block is handled by Pallas (OOB reads
    # are garbage but the op is lane-pointwise; OOB writes are dropped).
    grid = (n // b_blk, pl.cdiv(hw, tile))

    cost = pl.CostEstimate(
        flops=2 * n * hw * c_in * c_out,
        transcendentals=0,
        bytes_accessed=(n * hw * (c_in * x_bytes + c_out * out_bytes)
                        + 4 * (c_in * c_out + c_out)),
    )

    kernel = functools.partial(_fused_conv_bn_relu_kernel,
                               b_blk=b_blk, c_in=c_in, c_out=c_out)

    out3 = pl.pallas_call(
        kernel,
        out_shape=jax.ShapeDtypeStruct((n // b_blk, rows_out, hw), out_dtype),
        grid_spec=pltpu.PrefetchScalarGridSpec(
            num_scalar_prefetch=0,
            grid=grid,
            in_specs=[
                # batch-block dim squeezed out; kernel sees (rows_in, tile)
                pl.BlockSpec((None, rows_in, tile), lambda b, t: (b, 0, t)),
                pl.BlockSpec((c_out, c_in), lambda b, t: (0, 0)),
                pl.BlockSpec((c_out, 1), lambda b, t: (0, 0)),
            ],
            out_specs=pl.BlockSpec((None, rows_out, tile),
                                   lambda b, t: (b, 0, t)),
        ),
        compiler_params=pltpu.CompilerParams(
            dimension_semantics=("parallel", "parallel"),
            vmem_limit_bytes=32 * 1024 * 1024),
        cost_estimate=cost,
    )(x3, w_folded, shift)

    # Free contiguous reshapes back to NCHW.
    return out3.reshape(n, c_out, h, w)


if __name__ == "__main__":
    # Module config: in_channels=4, out_channels=8, use_bn=True, act_func='relu',
    # dropout_rate=0, ops_order='weight_bn_act'
    N, C_IN, H, W = 2, 4, 16, 16
    C_OUT = 8

    key = jax.random.PRNGKey(0)
    k_x, k_w, k_g, k_b, k_m, k_v = jax.random.split(key, 6)

    x = jax.random.normal(k_x, (N, C_IN, H, W), dtype=jnp.float32)
    weight = jax.random.normal(k_w, (C_OUT, C_IN), dtype=jnp.float32) * (
        1.0 / jnp.sqrt(C_IN))
    gamma = 1.0 + 0.1 * jax.random.normal(k_g, (C_OUT,), dtype=jnp.float32)
    beta = 0.1 * jax.random.normal(k_b, (C_OUT,), dtype=jnp.float32)
    running_mean = 0.1 * jax.random.normal(k_m, (C_OUT,), dtype=jnp.float32)
    running_var = jnp.abs(
        1.0 + 0.1 * jax.random.normal(k_v, (C_OUT,), dtype=jnp.float32))

    fwd = jax.jit(functools.partial(custom2d_layer_forward, eps=1e-5))
    out = fwd(x, weight, gamma, beta, running_mean, running_var)
    out = jax.block_until_ready(out)

    # Reference: 1x1 conv -> eval-mode BN -> ReLU in plain JAX.
    scale_ref = gamma * jax.lax.rsqrt(running_var + 1e-5)
    shift_ref = beta - running_mean * scale_ref
    conv_ref = jnp.einsum('oc,nchw->nohw', weight, x)
    ref = jnp.maximum(
        conv_ref * scale_ref[None, :, None, None]
        + shift_ref[None, :, None, None], 0.0)

    assert out.shape == (N, C_OUT, H, W)
    assert out.dtype == x.dtype
    assert bool(jnp.all(out >= 0.0))
    assert bool(jnp.allclose(out, ref, atol=1e-4, rtol=1e-4))
    print("KERNEL_OK")
</pallas_src>

<mosaic_0001>
module attributes {stable_mosaic.version = 11 : i64} {
  func.func @_fused_conv_bn_relu_kernel(%arg0: i32, %arg1: i32, %arg2: memref<1x8x256xf32, #tpu.memory_space<vmem>>, %arg3: memref<8x4xf32, #tpu.memory_space<vmem>>, %arg4: memref<8x1xf32, #tpu.memory_space<vmem>>, %arg5: memref<1x16x256xf32, #tpu.memory_space<vmem>>) attributes {dimension_semantics = [#tpu.dimension_semantics<parallel>, #tpu.dimension_semantics<parallel>], iteration_bounds = array<i64: 1, 1>, scalar_prefetch = 0 : i64, scratch_operands = 0 : i64, tpu.core_type = #tpu.core_type<tc>, window_params = [{transform_indices = @transform_0, window_bounds = array<i64: 1, 8, 256>}, {pipeline_mode = #tpu.pipeline_mode<synchronous>, transform_indices = @transform_1, window_bounds = array<i64: 8, 4>}, {pipeline_mode = #tpu.pipeline_mode<synchronous>, transform_indices = @transform_2, window_bounds = array<i64: 8, 1>}, {transform_indices = @transform_3, window_bounds = array<i64: 1, 16, 256>}]} {
    %c0 = arith.constant 0 : index
    %c0_0 = arith.constant 0 : index
    %0 = vector.load %arg3[%c0, %c0_0] : memref<8x4xf32, #tpu.memory_space<vmem>>, vector<8x4xf32>
    %c0_1 = arith.constant 0 : index
    %c0_2 = arith.constant 0 : index
    %1 = vector.load %arg4[%c0_1, %c0_2] : memref<8x1xf32, #tpu.memory_space<vmem>>, vector<8x1xf32>
    %c0_3 = arith.constant 0 : index
    %c0_4 = arith.constant 0 : index
    %c0_5 = arith.constant 0 : index
    %2 = vector.load %arg2[%c0_3, %c0_4, %c0_5] : memref<1x8x256xf32, #tpu.memory_space<vmem>>, vector<1x8x256xf32>
    %3 = vector.shape_cast %2 : vector<1x8x256xf32> to vector<8x256xf32>
    %4 = vector.extract_strided_slice %0 {offsets = [0, 0], sizes = [8, 1], strides = [1, 1]} : vector<8x4xf32> to vector<8x1xf32>
    %5 = vector.extract_strided_slice %3 {offsets = [0, 0], sizes = [1, 256], strides = [1, 1]} : vector<8x256xf32> to vector<1x256xf32>
    %6 = vector.broadcast %4 : vector<8x1xf32> to vector<8x256xf32>
    %7 = vector.broadcast %5 : vector<1x256xf32> to vector<8x256xf32>
    %8 = arith.mulf %6, %7 : vector<8x256xf32>
    %9 = vector.broadcast %1 : vector<8x1xf32> to vector<8x256xf32>
    %10 = arith.addf %8, %9 : vector<8x256xf32>
    %11 = vector.extract_strided_slice %0 {offsets = [0, 1], sizes = [8, 1], strides = [1, 1]} : vector<8x4xf32> to vector<8x1xf32>
    %12 = vector.extract_strided_slice %3 {offsets = [1, 0], sizes = [1, 256], strides = [1, 1]} : vector<8x256xf32> to vector<1x256xf32>
    %13 = vector.broadcast %11 : vector<8x1xf32> to vector<8x256xf32>
    %14 = vector.broadcast %12 : vector<1x256xf32> to vector<8x256xf32>
    %15 = arith.mulf %13, %14 : vector<8x256xf32>
    %16 = arith.addf %10, %15 : vector<8x256xf32>
    %17 = vector.extract_strided_slice %0 {offsets = [0, 2], sizes = [8, 1], strides = [1, 1]} : vector<8x4xf32> to vector<8x1xf32>
    %18 = vector.extract_strided_slice %3 {offsets = [2, 0], sizes = [1, 256], strides = [1, 1]} : vector<8x256xf32> to vector<1x256xf32>
    %19 = vector.broadcast %17 : vector<8x1xf32> to vector<8x256xf32>
    %20 = vector.broadcast %18 : vector<1x256xf32> to vector<8x256xf32>
    %21 = arith.mulf %19, %20 : vector<8x256xf32>
    %22 = arith.addf %16, %21 : vector<8x256xf32>
    %23 = vector.extract_strided_slice %0 {offsets = [0, 3], sizes = [8, 1], strides = [1, 1]} : vector<8x4xf32> to vector<8x1xf32>
    %24 = vector.extract_strided_slice %3 {offsets = [3, 0], sizes = [1, 256], strides = [1, 1]} : vector<8x256xf32> to vector<1x256xf32>
    %25 = vector.broadcast %23 : vector<8x1xf32> to vector<8x256xf32>
    %26 = vector.broadcast %24 : vector<1x256xf32> to vector<8x256xf32>
    %27 = arith.mulf %25, %26 : vector<8x256xf32>
    %28 = arith.addf %22, %27 : vector<8x256xf32>
    %29 = vector.extract_strided_slice %0 {offsets = [0, 0], sizes = [8, 1], strides = [1, 1]} : vector<8x4xf32> to vector<8x1xf32>
    %30 = vector.extract_strided_slice %3 {offsets = [4, 0], sizes = [1, 256], strides = [1, 1]} : vector<8x256xf32> to vector<1x256xf32>
    %31 = vector.broadcast %29 : vector<8x1xf32> to vector<8x256xf32>
    %32 = vector.broadcast %30 : vector<1x256xf32> to vector<8x256xf32>
    %33 = arith.mulf %31, %32 : vector<8x256xf32>
    %34 = vector.broadcast %1 : vector<8x1xf32> to vector<8x256xf32>
    %35 = arith.addf %33, %34 : vector<8x256xf32>
    %36 = vector.extract_strided_slice %0 {offsets = [0, 1], sizes = [8, 1], strides = [1, 1]} : vector<8x4xf32> to vector<8x1xf32>
    %37 = vector.extract_strided_slice %3 {offsets = [5, 0], sizes = [1, 256], strides = [1, 1]} : vector<8x256xf32> to vector<1x256xf32>
    %38 = vector.broadcast %36 : vector<8x1xf32> to vector<8x256xf32>
    %39 = vector.broadcast %37 : vector<1x256xf32> to vector<8x256xf32>
    %40 = arith.mulf %38, %39 : vector<8x256xf32>
    %41 = arith.addf %35, %40 : vector<8x256xf32>
    %42 = vector.extract_strided_slice %0 {offsets = [0, 2], sizes = [8, 1], strides = [1, 1]} : vector<8x4xf32> to vector<8x1xf32>
    %43 = vector.extract_strided_slice %3 {offsets = [6, 0], sizes = [1, 256], strides = [1, 1]} : vector<8x256xf32> to vector<1x256xf32>
    %44 = vector.broadcast %42 : vector<8x1xf32> to vector<8x256xf32>
    %45 = vector.broadcast %43 : vector<1x256xf32> to vector<8x256xf32>
    %46 = arith.mulf %44, %45 : vector<8x256xf32>
    %47 = arith.addf %41, %46 : vector<8x256xf32>
    %48 = vector.extract_strided_slice %0 {offsets = [0, 3], sizes = [8, 1], strides = [1, 1]} : vector<8x4xf32> to vector<8x1xf32>
    %49 = vector.extract_strided_slice %3 {offsets = [7, 0], sizes = [1, 256], strides = [1, 1]} : vector<8x256xf32> to vector<1x256xf32>
    %50 = vector.broadcast %48 : vector<8x1xf32> to vector<8x256xf32>
    %51 = vector.broadcast %49 : vector<1x256xf32> to vector<8x256xf32>
    %52 = arith.mulf %50, %51 : vector<8x256xf32>
    %53 = arith.addf %47, %52 : vector<8x256xf32>
    %54 = tpu.concatenate %28, %53 in 0 : vector<8x256xf32>, vector<8x256xf32> -> vector<16x256xf32>
    %cst = arith.constant 0.000000e+00 : f32
    %55 = vector.broadcast %cst : f32 to vector<16x256xf32>
    %56 = arith.maximumf %54, %55 : vector<16x256xf32>
    %c0_6 = arith.constant 0 : index
    %c0_7 = arith.constant 0 : index
    %c0_8 = arith.constant 0 : index
    %57 = vector.load %arg5[%c0_6, %c0_7, %c0_8] : memref<1x16x256xf32, #tpu.memory_space<vmem>>, vector<1x16x256xf32>
    %58 = vector.shape_cast %57 : vector<1x16x256xf32> to vector<16x256xf32>
    %59 = vector.shape_cast %56 : vector<16x256xf32> to vector<1x16x256xf32>
    tpu.vector_store %arg5[%c0_6, %c0_7, %c0_8], %59 {strides = array<i32>} : memref<1x16x256xf32, #tpu.memory_space<vmem>>, vector<1x16x256xf32>,
    return
  }
  func.func @transform_0(%arg0: i32, %arg1: i32) -> (i32, i32, i32) {
    %c0_i32 = arith.constant 0 : i32
    %c0_i32_0 = arith.constant 0 : i32
    return %arg0, %c0_i32, %arg1 : i32, i32, i32
  }
  func.func @transform_1(%arg0: i32, %arg1: i32) -> (i32, i32) {
    %c0_i32 = arith.constant 0 : i32
    %c0_i32_0 = arith.constant 0 : i32
    %c0_i32_1 = arith.constant 0 : i32
    return %c0_i32, %c0_i32_0 : i32, i32
  }
  func.func @transform_2(%arg0: i32, %arg1: i32) -> (i32, i32) {
    %c0_i32 = arith.constant 0 : i32
    %c0_i32_0 = arith.constant 0 : i32
    %c0_i32_1 = arith.constant 0 : i32
    return %c0_i32, %c0_i32_0 : i32, i32
  }
  func.func @transform_3(%arg0: i32, %arg1: i32) -> (i32, i32, i32) {
    %c0_i32 = arith.constant 0 : i32
    %c0_i32_0 = arith.constant 0 : i32
    return %arg0, %c0_i32, %arg1 : i32, i32, i32
  }
}

</mosaic_0001>

<bundles_post_ra>
// kernel: custom2d_layer_forward.1
= control target key start
LH: loop header
LB: loop body
LE: loop exit
PB: predicated region body
PF: predicated region fallthrough
CT: control target
= control target key end

     0   :  { %v109_v0 = vmov 0   ;;  %v110_v1 = vmov 1   ;;  %v111_v3 = vmov 3   ;;  %v112_v5 = vmov 2   ;;  %s157_s1 = inlined_call_operand.vmem [shape: f32[8,4], index: 1, kind: input, shape index: {}]   ;;  %s158_s2 = inlined_call_operand.vmem [shape: f32[8,1], index: 2, kind: input, shape index: {}]   ;;  %s159_s0 = inlined_call_operand.vmem [shape: f32[1,8,256], index: 0, kind: input, shape index: {}]   ;;  %s160_s3 = inlined_call_operand.vmem [shape: f32[1,16,256], index: 3, kind: output, shape index: {}]  }
   0x1   :  { %104 = vset.pattern.permute.xlu0 %v109_v0  ;;  %105 = vset.pattern.permute.xlu1 %v110_v1  ;;  %v14_v2 = vld [vmem:[%s157_s1] sm:$0xff]  ;;  %v17_v9 = vld [vmem:[%s159_s0 + $0x8] sm:$0xff] }
   0x2   :  { %20 = vperm.xlu0 %104, %v14_v2   ;;  %35 = vperm.xlu1 %105, %v14_v2   ;;  %v15_v4 = vld [vmem:[%s158_s2] sm:$0xff]  ;;  %v59_v11 = vperm.slane %v17_v9, 3  ;;  %v83_v13 = vperm.slane %v17_v9, 7  ;;  %v24_v15 = vperm.slane %v17_v9, 0  ;;  %v65_v17 = vperm.slane %v17_v9, 4 }
   0x3   :  { %107 = vset.pattern.permute.xlu2 %v111_v3  ;;  %v16_v8 = vld [vmem:[%s159_s0] sm:$0xff]  ;;  %v39_v20 = vperm.slane %v17_v9, 1  ;;  %v71_v22 = vperm.slane %v17_v9, 5  ;;  %v49_v24 = vperm.slane %v17_v9, 2  ;;  %v77_v26 = vperm.slane %v17_v9, 6 }
   0x4   :  { %55 = vperm.xlu2 %107, %v14_v2   ;;  %v58_v10 = vperm.slane %v16_v8, 3  ;;  %v82_v12 = vperm.slane %v16_v8, 7  ;;  %v23_v14 = vperm.slane %v16_v8, 0  ;;  %v64_v16 = vperm.slane %v16_v8, 4 }
   0x5   :  { %v38_v19 = vperm.slane %v16_v8, 1  ;;  %v70_v21 = vperm.slane %v16_v8, 5  ;;  %v48_v23 = vperm.slane %v16_v8, 2  ;;  %v76_v25 = vperm.slane %v16_v8, 6 }
   0xa   :  { %29 = vperm.xlu0 %104, %v15_v4   ;;  %106 = vset.pattern.permute.xlu1 %v112_v5 }
   0xb   :  { %45 = vperm.xlu1 %106, %v14_v2  }
  0x12   :  { %108 = vset.pattern.permute.xlu0 %v111_v3 }
  0x5e   :  { %v56_v18 = vpop.permute.xlu2 %55 }
  0x5f   :  { %v60_v27 = vmul.f32 %v58_v10, %v56_v18  ;;  %v61_v28 = vmul.f32 %v59_v11, %v56_v18  ;;  %v84_v29 = vmul.f32 %v82_v12, %v56_v18  ;;  %v85_v30 = vmul.f32 %v83_v13, %v56_v18 }
  0x74   :  { %v21_v6 = vpop.permute.xlu0 %20  ;;  %v36_v7 = vpop.permute.xlu1 %35 }
  0x75   :  { %v25_v31 = vmul.f32 %v23_v14, %v21_v6  ;;  %v26_v32 = vmul.f32 %v24_v15, %v21_v6  ;;  %v66_v33 = vmul.f32 %v64_v16, %v21_v6  ;;  %v67_v34 = vmul.f32 %v65_v17, %v21_v6 }
  0x76   :  { %v40_v35 = vmul.f32 %v38_v19, %v36_v7  ;;  %v41_v36 = vmul.f32 %v39_v20, %v36_v7  ;;  %v72_v37 = vmul.f32 %v70_v21, %v36_v7  ;;  %v73_v38 = vmul.f32 %v71_v22, %v36_v7 }
  0x7c   :  { %v30_v39 = vpop.permute.xlu0 %29 }
  0x7d   :  { %v32_v40 = vadd.f32 %v30_v39, %v25_v31  ;;  %v33_v41 = vadd.f32 %v30_v39, %v26_v32  ;;  %v68_v42 = vadd.f32 %v66_v33, %v30_v39  ;;  %v69_v43 = vadd.f32 %v67_v34, %v30_v39  ;;  %v46_v44 = vpop.permute.xlu1 %45 }
  0x7e   :  { %v50_v45 = vmul.f32 %v48_v23, %v46_v44  ;;  %v51_v46 = vmul.f32 %v49_v24, %v46_v44  ;;  %v78_v47 = vmul.f32 %v76_v25, %v46_v44  ;;  %v79_v48 = vmul.f32 %v77_v26, %v46_v44 }
  0x7f   :  { %v42_v49 = vadd.f32 %v40_v35, %v32_v40  ;;  %v43_v50 = vadd.f32 %v41_v36, %v33_v41  ;;  %v74_v51 = vadd.f32 %v72_v37, %v68_v42  ;;  %v75_v52 = vadd.f32 %v73_v38, %v69_v43 }
  0x81   :  { %v52_v53 = vadd.f32 %v50_v45, %v42_v49  ;;  %v53_v54 = vadd.f32 %v51_v46, %v43_v50  ;;  %v80_v55 = vadd.f32 %v78_v47, %v74_v51  ;;  %v81_v56 = vadd.f32 %v79_v48, %v75_v52 }
  0x83   :  { %v62_v57 = vadd.f32 %v60_v27, %v52_v53  ;;  %v63_v58 = vadd.f32 %v61_v28, %v53_v54  ;;  %v86_v59 = vadd.f32 %v84_v29, %v80_v55  ;;  %v87_v60 = vadd.f32 %v85_v30, %v81_v56 }
  0x85   :  { %v88_v61 = vmax.f32 %v62_v57, 0.0  ;;  %v89_v62 = vmax.f32 %v63_v58, 0.0  ;;  %v90_v63 = vmax.f32 %v86_v59, 0.0  ;;  %v91_v0 = vmax.f32 %v87_v60, 0.0 }
  0x87   :  { %92 = vst [vmem:[%s160_s3] sm:$0xff] %v88_v61 }
  0x88   :  { %93 = vst [vmem:[%s160_s3 + $0x8] sm:$0xff] %v89_v62 }
  0x89   :  { %94 = vst [vmem:[%s160_s3 + $0x10] sm:$0xff] %v90_v63 }
  0x8a   :  { %95 = vst [vmem:[%s160_s3 + $0x18] sm:$0xff] %v91_v0 }

</bundles_post_ra>
